<compile_context>
chip_gen: v7x
topology: tpu7x:2x2x1
jax: 0.10.0
libtpu: 0.0.40
codegen_flags: <defaults>
</compile_context>

<pallas_src>
import functools
import random

import jax
import jax.numpy as jnp
from jax.experimental import pallas as pl
from jax.experimental.pallas import tpu as pltpu

NEG_SLOPE = 0.2
BN_EPS = 1e-5
K_NEIGHBORS = 20
ROW_TILE = 512          # rows per MXU tile (divisor-adjusted per shape)


def _leaky_relu(y):
    return jnp.where(y > 0, y, NEG_SLOPE * y)


def _pick_tile(n, max_tile=ROW_TILE):
    """Largest sublane-friendly divisor of n that is <= max_tile."""
    if n <= max_tile:
        return n
    for t in range(max_tile, 0, -1):
        if n % t == 0 and t % 8 == 0:
            return t
    return n


# ----------------------------- Pallas kernels -----------------------------

def _pdist_kernel(xq_ref, xall_ref, o_ref):
    # xq_ref: (1, TQ, C) query rows; xall_ref: (1, N, C) all points of batch b.
    xq = xq_ref[0].astype(jnp.float32)
    xa = xall_ref[0].astype(jnp.float32)
    g = jax.lax.dot_general(xq, xa, (((1,), (1,)), ((), ())),
                            preferred_element_type=jnp.float32)       # (TQ, N)
    xsq = xa * xa
    ones = jnp.ones((1, xa.shape[1]), jnp.float32)
    s_row = jax.lax.dot_general(ones, xsq, (((1,), (1,)), ((), ())),
                                preferred_element_type=jnp.float32)   # (1, N)
    # top_k runs along the last axis, so the per-query -||x_q||^2 term (a
    # row-constant) cannot change the selected indices and is dropped.
    o_ref[0] = 2.0 * g - s_row


def _pointwise_kernel(x_ref, w_ref, b_ref, o_ref, *, act):
    # (1, TN, Cin) @ (Cin, Cout) + bias [+ LeakyReLU]; bf16 MXU, f32 accum.
    x = x_ref[0].astype(w_ref.dtype)
    y = jnp.dot(x, w_ref[...], preferred_element_type=jnp.float32)
    y = y + b_ref[...]
    if act:
        y = _leaky_relu(y)
    o_ref[0] = y.astype(o_ref.dtype)


def _conv_pool_kernel(x_ref, w_ref, b_ref, o_ref):
    # Fused 1x1 conv + BN + LeakyReLU + running max over the points axis.
    # Output block (1, 1, Cout) stays resident across the N (arbitrary) axis.
    i = pl.program_id(1)
    x = x_ref[0].astype(w_ref.dtype)
    y = jnp.dot(x, w_ref[...], preferred_element_type=jnp.float32)
    y = _leaky_relu(y + b_ref[...])

    @pl.when(i == 0)
    def _():
        o_ref[0] = jnp.full(o_ref.shape[1:], -jnp.inf, o_ref.dtype)

    o_ref[0] = jnp.maximum(o_ref[0], jnp.max(y, axis=0, keepdims=True))


def _pool_kernel(x_ref, o_ref):
    # Global max over the points axis (used only on the layer_mix==4 trace).
    i = pl.program_id(1)

    @pl.when(i == 0)
    def _():
        o_ref[0] = jnp.full(o_ref.shape[1:], -jnp.inf, o_ref.dtype)

    o_ref[0] = jnp.maximum(
        o_ref[0], jnp.max(x_ref[0].astype(jnp.float32), axis=0, keepdims=True))


def _head_kernel(p_ref, w1_ref, b1_ref, w2_ref, b2_ref, o_ref):
    # (B, 1024) -> Linear/BN/LReLU -> Linear; weights pre-folded with BN6.
    h = jnp.dot(p_ref[...].astype(w1_ref.dtype), w1_ref[...],
                preferred_element_type=jnp.float32)
    h = _leaky_relu(h + b1_ref[...])
    # TODO(synk): nn.Dropout(0.5) applied as inference-mode identity.
    o_ref[...] = (jnp.dot(h.astype(w2_ref.dtype), w2_ref[...],
                          preferred_element_type=jnp.float32) + b2_ref[...])


# ----------------------------- kernel wrappers -----------------------------

def pairwise_knn_scores(feat_bnc, tile_q=ROW_TILE):
    B, N, C = feat_bnc.shape
    tq = _pick_tile(N, tile_q)
    return pl.pallas_call(
        _pdist_kernel,
        out_shape=jax.ShapeDtypeStruct((B, N, N), jnp.float32),
        grid=(B, N // tq),
        in_specs=[
            pl.BlockSpec((1, tq, C), lambda b, i: (b, i, 0)),
            pl.BlockSpec((1, N, C), lambda b, i: (b, 0, 0)),
        ],
        out_specs=pl.BlockSpec((1, tq, N), lambda b, i: (b, i, 0)),
        compiler_params=pltpu.CompilerParams(
            dimension_semantics=("parallel", "parallel")),
    )(feat_bnc, feat_bnc)


def pointwise_matmul(x_bnc, w, bias, *, act, out_dtype=jnp.float32,
                     tile_n=ROW_TILE):
    B, N, C = x_bnc.shape
    cout = w.shape[1]
    tn = _pick_tile(N, tile_n)
    # Tiny-K first layer (C=3) stays f32; everything else goes bf16 to the MXU.
    compute_dtype = jnp.bfloat16 if C >= 8 else jnp.float32
    kernel = functools.partial(_pointwise_kernel, act=act)
    return pl.pallas_call(
        kernel,
        out_shape=jax.ShapeDtypeStruct((B, N, cout), out_dtype),
        grid=(B, N // tn),
        in_specs=[
            pl.BlockSpec((1, tn, C), lambda b, i: (b, i, 0)),
            pl.BlockSpec((C, cout), lambda b, i: (0, 0)),
            pl.BlockSpec((1, cout), lambda b, i: (0, 0)),
        ],
        out_specs=pl.BlockSpec((1, tn, cout), lambda b, i: (b, i, 0)),
        compiler_params=pltpu.CompilerParams(
            dimension_semantics=("parallel", "parallel")),
    )(x_bnc, w.astype(compute_dtype), bias.astype(jnp.float32))


def conv_bn_lrelu_maxpool(x_bnc, w, bn_scale, bn_bias, *, tile_n=ROW_TILE):
    B, N, C = x_bnc.shape
    cout = w.shape[1]
    tn = _pick_tile(N, tile_n)
    w_eff = (w * bn_scale).astype(jnp.bfloat16)
    out = pl.pallas_call(
        _conv_pool_kernel,
        out_shape=jax.ShapeDtypeStruct((B, 1, cout), jnp.float32),
        grid=(B, N // tn),
        in_specs=[
            pl.BlockSpec((1, tn, C), lambda b, i: (b, i, 0)),
            pl.BlockSpec((C, cout), lambda b, i: (0, 0)),
            pl.BlockSpec((1, cout), lambda b, i: (0, 0)),
        ],
        out_specs=pl.BlockSpec((1, 1, cout), lambda b, i: (b, 0, 0)),
        compiler_params=pltpu.CompilerParams(
            dimension_semantics=("parallel", "arbitrary")),
    )(x_bnc, w_eff, bn_bias.astype(jnp.float32))
    return out[:, 0, :]


def maxpool_points(x_bnc, *, tile_n=ROW_TILE):
    B, N, C = x_bnc.shape
    tn = _pick_tile(N, tile_n)
    out = pl.pallas_call(
        _pool_kernel,
        out_shape=jax.ShapeDtypeStruct((B, 1, C), jnp.float32),
        grid=(B, N // tn),
        in_specs=[pl.BlockSpec((1, tn, C), lambda b, i: (b, i, 0))],
        out_specs=pl.BlockSpec((1, 1, C), lambda b, i: (b, 0, 0)),
        compiler_params=pltpu.CompilerParams(
            dimension_semantics=("parallel", "arbitrary")),
    )(x_bnc)
    return out[:, 0, :]


def mlp_head(pooled, w1, b1, w2, b2):
    B = pooled.shape[0]
    dout = w2.shape[1]

    def _full(a):
        nd = a.ndim
        return pl.BlockSpec(a.shape, lambda *_i, _nd=nd: (0,) * _nd)

    args = (pooled, w1.astype(jnp.bfloat16), b1.astype(jnp.float32),
            w2.astype(jnp.bfloat16), b2.astype(jnp.float32))
    return pl.pallas_call(
        _head_kernel,
        out_shape=jax.ShapeDtypeStruct((B, dout), jnp.float32),
        grid=(1,),
        in_specs=[_full(a) for a in args],
        out_specs=pl.BlockSpec((B, dout), lambda i: (0, 0)),
    )(*args)


# ------------------------------- JAX glue --------------------------------

def knn_indices(feat_bnc, k):
    scores = pairwise_knn_scores(feat_bnc)                # (B, N, N) f32
    # TODO(synk): top-k neighbor selection has no clean Pallas equivalent; JAX.
    return jax.lax.top_k(scores, k)[1]                    # (B, N, k)


def edgeconv_layer(feat_bnc, idx, w, bn_scale, bn_bias, *, tile_n=ROW_TILE):
    """conv([nbr - center, center]) + BN + LeakyReLU + max over k, factored."""
    B, N, C = feat_bnc.shape
    cout = w.shape[1]
    w_a, w_b = w[:C], w[C:]
    # edge @ W = nbr @ W_a + center @ (W_b - W_a); fold BN scale into weights
    # so the max over neighbors commutes with the per-channel affine.
    w_eff = jnp.concatenate([w_a * bn_scale, (w_b - w_a) * bn_scale], axis=1)
    bias_eff = jnp.concatenate(
        [jnp.zeros((1, cout), jnp.float32), bn_bias], axis=1)
    pq = pointwise_matmul(feat_bnc, w_eff, bias_eff, act=False,
                          out_dtype=jnp.bfloat16, tile_n=tile_n)  # (B,N,2*cout)
    p, q = pq[..., :cout], pq[..., cout:]
    # TODO(synk): the knn row gather + max over k has no static-BlockSpec
    # Pallas form; left to XLA, which fuses gather -> reduce_max on TPU.
    b_idx = jnp.arange(B)[:, None, None]
    nbr_max = jnp.max(p[b_idx, idx], axis=2)                       # (B, N, cout)
    return _leaky_relu(nbr_max.astype(jnp.float32) + q.astype(jnp.float32))


def uniform_mixup(x1, x2, lam):
    # features are channels-last (B, N, C); torch slices the points axis.
    N = x1.shape[1]
    n1 = int(lam * N)
    return jnp.concatenate([x1[:, :n1], x2[:, :N - n1]], axis=1)


def mixup_data4(x, y, lam, key):
    perm = jax.random.permutation(key, x.shape[0])
    return uniform_mixup(x, x[perm], lam), y, y[perm], lam


def init_params(key):
    ks = jax.random.split(key, 7)

    def w(k, cin, cout):
        bound = 1.0 / float(cin) ** 0.5
        return jax.random.uniform(k, (cin, cout), jnp.float32, -bound, bound)

    def bn(c):
        # TODO(synk): inference-mode BatchNorm (gamma=1, beta=0, mean=0, var=1).
        scale = jnp.full((1, c), 1.0 / (1.0 + BN_EPS) ** 0.5, jnp.float32)
        bias = jnp.zeros((1, c), jnp.float32)
        return scale, bias

    p = {
        "w1": w(ks[0], 6, 64),
        "w2": w(ks[1], 128, 64),
        "w3": w(ks[2], 128, 128),
        "w4": w(ks[3], 256, 256),
        "w5": w(ks[4], 512, 1024),
        "li_w1": w(ks[5], 1024, 512),
        "li_b1": jnp.zeros((1, 512), jnp.float32),
        "li_w2": w(ks[6], 512, 256),
        "li_b2": jnp.zeros((1, 256), jnp.float32),
    }
    for name, c in [("bn1", 64), ("bn2", 64), ("bn3", 128), ("bn4", 256),
                    ("bn5", 1024), ("bn6", 512)]:
        s, b = bn(c)
        p[name + "_s"], p[name + "_b"] = s, b
    return p


def dgcnn_mm4_forward(params, x, target, mixup_hidden=True, lam=0.4,
                      mixup_key=None):
    assert target is not None
    if mixup_key is None:
        mixup_key = jax.random.PRNGKey(1)
    B, _, N = x.shape
    # TODO(synk): torch draws layer_mix with python `random` every forward;
    # under jit the draw is baked into the trace.
    layer_mix = random.randint(0, 5) if mixup_hidden else None
    target_a = target_b = target

    out = jnp.transpose(x, (0, 2, 1)).astype(jnp.float32)           # (B, N, 3)
    if layer_mix == 0:
        out, target_a, target_b, lam = mixup_data4(out, target, lam, mixup_key)

    idx = knn_indices(out, K_NEIGHBORS)
    x1 = edgeconv_layer(out, idx, params["w1"], params["bn1_s"], params["bn1_b"])
    out = x1
    if layer_mix == 1:
        out, target_a, target_b, lam = mixup_data4(out, target, lam, mixup_key)

    idx = knn_indices(out, K_NEIGHBORS)
    x2 = edgeconv_layer(out, idx, params["w2"], params["bn2_s"], params["bn2_b"])
    out = x2
    if layer_mix == 2:
        out, target_a, target_b, lam = mixup_data4(out, target, lam, mixup_key)

    idx = knn_indices(out, K_NEIGHBORS)
    x3 = edgeconv_layer(out, idx, params["w3"], params["bn3_s"], params["bn3_b"])
    out = x3
    if layer_mix == 3:
        out, target_a, target_b, lam = mixup_data4(out, target, lam, mixup_key)

    idx = knn_indices(out, K_NEIGHBORS)
    x4 = edgeconv_layer(out, idx, params["w4"], params["bn4_s"], params["bn4_b"])

    cat = jnp.concatenate([x1, x2, x3, x4], axis=-1)                # (B, N, 512)

    if layer_mix == 4:
        # Mixup needs the full (B, N, 1024) conv5 activation -> unfused path.
        h5 = pointwise_matmul(cat, params["w5"] * params["bn5_s"],
                              params["bn5_b"], act=True,
                              out_dtype=jnp.float32)
        h5, target_a, target_b, lam = mixup_data4(h5, target, lam, mixup_key)
        pooled = maxpool_points(h5)                                 # (B, 1024)
    else:
        pooled = conv_bn_lrelu_maxpool(cat, params["w5"], params["bn5_s"],
                                       params["bn5_b"])             # (B, 1024)

    w1_eff = params["li_w1"] * params["bn6_s"]
    b1_eff = params["li_b1"] * params["bn6_s"] + params["bn6_b"]
    logits = mlp_head(pooled, w1_eff, b1_eff, params["li_w2"], params["li_b2"])
    return logits, target_a, target_b


if __name__ == "__main__":
    random.seed(0)  # makes layer_mix (torch: random.randint(0, 5)) deterministic
    key = jax.random.PRNGKey(0)
    pkey, xkey, mkey = jax.random.split(key, 3)
    params = init_params(pkey)

    B, C, N = 2, 3, 128                    # small shapes; k=20 as in the module
    x = jax.random.normal(xkey, (B, C, N), jnp.float32)
    target = jnp.arange(B, dtype=jnp.int32)

    logits, target_a, target_b = dgcnn_mm4_forward(params, x, target,
                                                   mixup_hidden=True, lam=0.4,
                                                   mixup_key=mkey)
    jax.block_until_ready(logits)
    assert logits.shape == (B, 256)
    assert target_a.shape == (B,) and target_b.shape == (B,)
    assert bool(jnp.all(jnp.isfinite(logits)))
    print("KERNEL_OK")
</pallas_src>

<mosaic_0001>
module attributes {stable_mosaic.version = 11 : i64} {
  func.func @_pdist_kernel(%arg0: i32, %arg1: i32, %arg2: memref<1x128x3xf32, #tpu.memory_space<vmem>>, %arg3: memref<1x128x3xf32, #tpu.memory_space<vmem>>, %arg4: memref<1x128x128xf32, #tpu.memory_space<vmem>>) attributes {dimension_semantics = [#tpu.dimension_semantics<parallel>, #tpu.dimension_semantics<parallel>], iteration_bounds = array<i64: 2, 1>, scalar_prefetch = 0 : i64, scratch_operands = 0 : i64, tpu.core_type = #tpu.core_type<tc>, window_params = [{transform_indices = @transform_0, window_bounds = array<i64: 1, 128, 3>}, {transform_indices = @transform_1, window_bounds = array<i64: 1, 128, 3>}, {transform_indices = @transform_2, window_bounds = array<i64: 1, 128, 128>}]} {
    %c0 = arith.constant 0 : index
    %c0_0 = arith.constant 0 : index
    %c0_1 = arith.constant 0 : index
    %0 = vector.load %arg2[%c0, %c0_0, %c0_1] : memref<1x128x3xf32, #tpu.memory_space<vmem>>, vector<1x128x3xf32>
    %1 = vector.shape_cast %0 : vector<1x128x3xf32> to vector<128x3xf32>
    %c0_2 = arith.constant 0 : index
    %c0_3 = arith.constant 0 : index
    %c0_4 = arith.constant 0 : index
    %2 = vector.load %arg3[%c0_2, %c0_3, %c0_4] : memref<1x128x3xf32, #tpu.memory_space<vmem>>, vector<1x128x3xf32>
    %3 = vector.shape_cast %2 : vector<1x128x3xf32> to vector<128x3xf32>
    %cst = arith.constant dense<0.000000e+00> : vector<128x128xf32>
    %4 = tpu.matmul %1, %3, %cst {dimension_numbers = #tpu.dot_dimension_numbers<[1], [1], [0], [0], [0, 0, 1, 0], [], []>} : vector<128x3xf32>, vector<128x3xf32>, vector<128x128xf32> -> vector<128x128xf32>
    %5 = arith.mulf %3, %3 : vector<128x3xf32>
    %cst_5 = arith.constant 1.000000e+00 : f32
    %6 = vector.broadcast %cst_5 : f32 to vector<1x3xf32>
    %cst_6 = arith.constant dense<0.000000e+00> : vector<1x128xf32>
    %7 = tpu.matmul %6, %5, %cst_6 {dimension_numbers = #tpu.dot_dimension_numbers<[1], [1], [0], [0], [0, 0, 1, 0], [], []>} : vector<1x3xf32>, vector<128x3xf32>, vector<1x128xf32> -> vector<1x128xf32>
    %cst_7 = arith.constant 2.000000e+00 : f32
    %8 = vector.broadcast %cst_7 : f32 to vector<128x128xf32>
    %9 = arith.mulf %8, %4 : vector<128x128xf32>
    %10 = vector.broadcast %7 : vector<1x128xf32> to vector<128x128xf32>
    %11 = arith.subf %9, %10 : vector<128x128xf32>
    %c0_8 = arith.constant 0 : index
    %c0_9 = arith.constant 0 : index
    %c0_10 = arith.constant 0 : index
    %12 = vector.load %arg4[%c0_8, %c0_9, %c0_10] : memref<1x128x128xf32, #tpu.memory_space<vmem>>, vector<1x128x128xf32>
    %13 = vector.shape_cast %12 : vector<1x128x128xf32> to vector<128x128xf32>
    %14 = vector.shape_cast %11 : vector<128x128xf32> to vector<1x128x128xf32>
    tpu.vector_store %arg4[%c0_8, %c0_9, %c0_10], %14 {strides = array<i32>} : memref<1x128x128xf32, #tpu.memory_space<vmem>>, vector<1x128x128xf32>,
    return
  }
  func.func @transform_0(%arg0: i32, %arg1: i32) -> (i32, i32, i32) {
    %c0_i32 = arith.constant 0 : i32
    %c0_i32_0 = arith.constant 0 : i32
    return %arg0, %arg1, %c0_i32 : i32, i32, i32
  }
  func.func @transform_1(%arg0: i32, %arg1: i32) -> (i32, i32, i32) {
    %c0_i32 = arith.constant 0 : i32
    %c0_i32_0 = arith.constant 0 : i32
    %c0_i32_1 = arith.constant 0 : i32
    return %arg0, %c0_i32, %c0_i32_0 : i32, i32, i32
  }
  func.func @transform_2(%arg0: i32, %arg1: i32) -> (i32, i32, i32) {
    %c0_i32 = arith.constant 0 : i32
    %c0_i32_0 = arith.constant 0 : i32
    return %arg0, %arg1, %c0_i32 : i32, i32, i32
  }
}

</mosaic_0001>

<bundles_post_ra>
// kernel: tpu_custom_call.1
= control target key start
LH: loop header
LB: loop body
LE: loop exit
PB: predicated region body
PF: predicated region fallthrough
CT: control target
= control target key end

     0   :  { %7 = vsyncpa [#allocation3], 0  ;;  %s1487_s0 = inlined_call_operand.vmem [shape: f32[2,128,3], index: 0, kind: input, shape index: {}]   ;;  %s1488_s1 = inlined_call_operand.vmem [shape: f32[2,128,3], index: 1, kind: input, shape index: {}]   ;;  %s1489_s2 = inlined_call_operand.hbm [shape: f32[2,128,128], index: 2, kind: output, shape index: {}]  }
   0x1   :  { %9 = vsyncpa [#allocation3 + $0x1], 0  ;;  %s1213_s9 = smov 0   ;;  %s1215_s10 = smov 0  }
   0x2   :  { %s1217_s11 = smov 0   ;;  %s1219_s12 = smov 0  }
   0x3   :  { %s1221_s13 = smov 0   ;;  %s1223_s14 = smov 0  }
   0x4 LB: > { %s763_s15 = sadd.s32 4294967295, %s1189_s14   ;;  %s764_s16 = sadd.s32 4294967294, %s1189_s14   ;;  %s1189_s14 = sphi %s1223_s14, %s15_s14   ;;  %s1185_s13 = sphi %s1221_s13, %s1498_s13   ;;  %s1181_s12 = sphi %s1219_s12, %s1497_s12   ;;  %s1177_s11 = sphi %s1217_s11, %s1496_s11   ;;  %s1173_s10 = sphi %s1215_s10, %s1495_s10   ;;  %s1169_s9 = sphi %s1213_s9, %s1494_s9  }
   0x5   : > { %s27_s17 = sadd.s32 1, %s1185_s13  ;;  %s90_s18 = sadd.s32 1, %s1177_s11 }
   0x6   : > { %p29_p0 = scmp.ge.s32.totalorder %s27_s17, 2  ;;  %p100_p1 = scmp.ne.s32.totalorder %s1177_s11, %s1173_s10 }
   0x7   : > { %p101_p2 = scmp.eq.s32.totalorder %s763_s15, 1  ;;  %p106_p3 = scmp.ne.s32.totalorder %s1173_s10, %s1169_s9 }
   0x8   : > { %s1500_s17 = smov (%p29_p0, %s27_s17), 0  ;;  %p107_p5 = scmp.eq.s32.totalorder %s764_s16, 1 }
   0x9   : > { %p1253_p4 = por %p101_p2, %p100_p1  ;;  %s85_s20 = ssub.s32 %s1185_s13, %s1500_s17 }
   0xa   : > { %p767_p6 = scmp.ge.s32.totalorder %s1189_s14, 1  ;;  %p88_p7 = scmp.eq.s32.totalorder %s85_s20, 0 }
   0xb   : > { %p1260_p8 = por %p107_p5, %p106_p3  ;;  %p146_p9 = scmp.lt.s32.totalorder %s1189_s14, 3 }
   0xc   : > { %s1266_s22 = scalar_select %p88_p7, %s1177_s11, %s90_s18  }
   0xd   : > { %p147_p10 = pnand %p767_p6, %p146_p9 }
   0xe   : > { %p178_p11 = scmp.lt.s32.totalorder (!%p147_p10), %s1181_s12, 1  ;;  %v1191_v0 = vmov (!%p147_p10), 0.0|0.0   ;;  %vm1192_vm0 = vmmov (!%p147_p10), 0   ;;  %v1193_v1 = vmov (!%p147_p10), 0.0   ;;  %vm225_vm1 = vcmask (!%p147_p10), 23552   ;;  %s174_s3 = sand.u32 (!%p147_p10), 1, %s1173_s10  }
   0xf   : > { %150 = sbr.rel (%p147_p10) target bundleno = 353 (0x161), region = 28  ;;  %1018 = vmatprep.subr.bf16.mxu1 (!%p147_p10), %v1191_v0  ;;  %967 = vmatprep.mubr.msk.f32.mxu1 (!%p147_p10), %vm1192_vm0, %v1193_v1  ;;  %vm1278_vm2 = vmpackc.low (!%p147_p10), %vm225_vm1, %vm225_vm1  ;;  %v1194_v54 = vmov (!%p147_p10), 1.0   ;;  %s768_s4 = sshll.u32 (!%p147_p10), %s174_s3, 7 }
  0x10   : > { %s1398_s5 = scalar_lea.vmem (!%p147_p10), [#allocation2], %s768_s4  ;;  %s829_s6 = sshll.u32 (!%p147_p10), %s1181_s12, 11 }
  0x11   : > { %s672_s7 = sshll.u32 (!%p147_p10), %s1398_s5, 4  ;;  %s1432_s16 = scalar_lea.hbm (!%p147_p10), %s1489_s2, %s829_s6  ;;  %s1434_s7 = int_to_ptr.vmem [resolvable:$true] %s672_s7 }
  0x12   : > { %s1111_s18 = scalar_lea.vmem (!%p147_p10), %s1434_s7, 2048  ;;  %s1195_s20 = smov (!%p147_p10), [#allocation2]  }
  0x13   : > { %p1112_p12 = scmp.ne.s32.totalorder (!%p147_p10), %s1434_s7, %s1111_s18 }
  0x15   : > { %p1113_p13 = pnand (!%p147_p10), %p1112_p12, %p1253_p4 }
  0x16   : > { %s179_s23 = scalar_select %p178_p11, %s1181_s12, 1 }
  0x17   : > { %s1441_s12 = scalar_lea.sflag [#allocation3], %s174_s3  ;;  %p1114_p0 = pneg %p1113_p13 }
  0x18   : > { %s827_s24 = sshll.u32 %s179_s23, 7  ;;  %s1115_s23 = sshll.u32 %s1195_s20, 4  ;;  %s1116_s23 = int_to_ptr.vmem [resolvable:$false] %s1115_s23 }
  0x19   : > { %s1274_s27 = scalar_lea.vmem %s1488_s1, %s827_s24  ;;  %s1289_s30 = scalar_lea.vmem %s1487_s0, %s827_s24 }
  0x1a   : > { %v209_v3 = vld [vmem:[%s1274_s27] sm:$0xff]  ;;  %v210_v4 = vld [vmem:[%s1274_s27 + $0x8] sm:$0xff]  ;;  %v211_v5 = vld [vmem:[%s1274_s27 + $0x10] sm:$0xff]  ;;  %s1117_s24 = scalar_lea.vmem %s1116_s23, 4096  ;;  %p1118_p1 = scmp.lt.s32.totalorder %s1434_s7, %s1116_s23 }
  0x1b   : > { %v970_v6 = vpack.c.bf16 %v210_v4, %v209_v3  ;;  %v467_v7 = vmul.f32 %v209_v3, %v209_v3  ;;  %v468_v8 = vmul.f32 %v210_v4, %v210_v4  ;;  %v212_v9 = vld [vmem:[%s1274_s27 + $0x18] sm:$0xff]  ;;  %v469_v12 = vmul.f32 %v211_v5, %v211_v5  ;;  %v193_v14 = vld [vmem:[%s1289_s30] sm:$0xff]  ;;  %v214_v16 = vld [vmem:[%s1274_s27 + $0x28] sm:$0xff]  ;;  %p1119_p2 = scmp.lt.s32.totalorder %s1117_s24, %s1111_s18 }
  0x1c   : > { %v976_v10 = vpack.c.bf16 %v212_v9, %v211_v5  ;;  %v470_v13 = vmul.f32 %v212_v9, %v212_v9  ;;  %v213_v15 = vld [vmem:[%s1274_s27 + $0x20] sm:$0xff]  ;;  %911 = vmatprep.mubr.msk.f32.mxu0 %vm225_vm1, %v193_v14  ;;  %v472_v20 = vmul.f32 %v214_v16, %v214_v16  ;;  %v215_v21 = vld [vmem:[%s1274_s27 + $0x30] sm:$0xff]  ;;  %v216_v22 = vld [vmem:[%s1274_s27 + $0x38] sm:$0xff]  ;;  %v620_v4 = vlaneseq }
  0x1d   : > { %972 = vmatprep.subr.msk.bf16.mxu0 %vm1278_vm2, %v970_v6  ;;  %v1019_v11 = vpack.c.bf16 %v468_v8, %v467_v7  ;;  %v982_v18 = vpack.c.bf16 %v214_v16, %v213_v15  ;;  %v471_v19 = vmul.f32 %v213_v15, %v213_v15  ;;  %v988_v24 = vpack.c.bf16 %v216_v22, %v215_v21  ;;  %v217_v27 = vld [vmem:[%s1274_s27 + $0x40] sm:$0xff]  ;;  %v218_v28 = vld [vmem:[%s1274_s27 + $0x48] sm:$0xff]  ;;  %v219_v33 = vld [vmem:[%s1274_s27 + $0x50] sm:$0xff]  ;;  %p1120_p3 = por %p1119_p2, %p1118_p1 }
  0x1e   : > { %975 = vmatpush3.bf16.xpose.msk.msra.mxu0 %vm1278_vm2, %v970_v6  ;;  %v1023_v17 = vpack.c.bf16 %v470_v13, %v469_v12  ;;  %v473_v25 = vmul.f32 %v215_v21, %v215_v21  ;;  %v474_v26 = vmul.f32 %v216_v22, %v216_v22  ;;  %v994_v30 = vpack.c.bf16 %v218_v28, %v217_v27  ;;  %v220_v34 = vld [vmem:[%s1274_s27 + $0x58] sm:$0xff]  ;;  %v221_v39 = vld [vmem:[%s1274_s27 + $0x60] sm:$0xff]  ;;  %v222_v40 = vld [vmem:[%s1274_s27 + $0x68] sm:$0xff] }
  0x1f   : > { %1021 = vmatpush3.bf16.xpose.msk.msra.mxu1 %vm1278_vm2, %v1019_v11  ;;  %978 = vmatprep.subr.msk.bf16.mxu0 %vm1278_vm2, %v976_v10  ;;  %v1027_v23 = vpack.c.bf16 %v472_v20, %v471_v19  ;;  %v475_v31 = vmul.f32 %v217_v27, %v217_v27  ;;  %v476_v32 = vmul.f32 %v218_v28, %v218_v28  ;;  %v223_v45 = vld [vmem:[%s1274_s27 + $0x70] sm:$0xff]  ;;  %v224_v46 = vld [vmem:[%s1274_s27 + $0x78] sm:$0xff]  ;;  %v194_v52 = vld [vmem:[%s1289_s30 + $0x8] sm:$0xff]  ;;  %v621_v5 = vshrl.u32 %v620_v4, 7  ;;  %p1121_p5 = pnand %p1120_p3, %p1114_p0 }
  0x20   : > { %1022 = vmatprep.subr.bf16.mxu1 %v1191_v0  ;;  %v1031_v29 = vpack.c.bf16 %v474_v26, %v473_v25  ;;  %v1000_v36 = vpack.c.bf16 %v220_v34, %v219_v33  ;;  %v477_v37 = vmul.f32 %v219_v33, %v219_v33  ;;  %v478_v38 = vmul.f32 %v220_v34, %v220_v34  ;;  %v195_v53 = vld [vmem:[%s1289_s30 + $0x10] sm:$0xff]  ;;  %v196_v55 = vld [vmem:[%s1289_s30 + $0x18] sm:$0xff]  ;;  %v197_v56 = vld [vmem:[%s1289_s30 + $0x20] sm:$0xff] }
  0x21   : > { %v1035_v35 = vpack.c.bf16 %v476_v32, %v475_v31  ;;  %v1006_v42 = vpack.c.bf16 %v222_v40, %v221_v39  ;;  %v479_v43 = vmul.f32 %v221_v39, %v221_v39  ;;  %v480_v44 = vmul.f32 %v222_v40, %v222_v40  ;;  %v198_v57 = vld [vmem:[%s1289_s30 + $0x28] sm:$0xff]  ;;  %v199_v58 = vld [vmem:[%s1289_s30 + $0x30] sm:$0xff]  ;;  %v200_v59 = vld [vmem:[%s1289_s30 + $0x38] sm:$0xff] }
  0x22   : > { %v1039_v41 = vpack.c.bf16 %v478_v38, %v477_v37  ;;  %v1012_v48 = vpack.c.bf16 %v224_v46, %v223_v45  ;;  %v481_v49 = vmul.f32 %v223_v45, %v223_v45  ;;  %v482_v50 = vmul.f32 %v224_v46, %v224_v46  ;;  %v201_v60 = vld [vmem:[%s1289_s30 + $0x40] sm:$0xff]  ;;  %v202_v61 = vld [vmem:[%s1289_s30 + $0x48] sm:$0xff]  ;;  %v203_v62 = vld [vmem:[%s1289_s30 + $0x50] sm:$0xff] }
  0x23   : > { %v1043_v47 = vpack.c.bf16 %v480_v44, %v479_v43  ;;  %v204_v63 = vld [vmem:[%s1289_s30 + $0x58] sm:$0xff]  ;;  %v206_v1 = vld [vmem:[%s1289_s30 + $0x68] sm:$0xff]  ;;  %v207_v2 = vld [vmem:[%s1289_s30 + $0x70] sm:$0xff]  ;;  %v622_v6 = vsub.s32 0, %v621_v5 }
  0x24   : > { %v1047_v51 = vpack.c.bf16 %v482_v50, %v481_v49  ;;  %v208_v3 = vld [vmem:[%s1289_s30 + $0x78] sm:$0xff] }
  0x26   : > { %981 = vmatpush3.bf16.xpose.msk.msra.mxu0 %vm1278_vm2, %v976_v10 }
  0x27   : > { %1025 = vmatpush3.bf16.xpose.msk.msra.mxu1 %vm1278_vm2, %v1023_v17  ;;  %984 = vmatprep.subr.msk.bf16.mxu0 %vm1278_vm2, %v982_v18 }
  0x28   : > { %1026 = vmatprep.subr.bf16.mxu1 %v1191_v0 }
  0x2e   : > { %987 = vmatpush3.bf16.xpose.msk.msra.mxu0 %vm1278_vm2, %v982_v18 }
  0x2f   : > { %1029 = vmatpush3.bf16.xpose.msk.msra.mxu1 %vm1278_vm2, %v1027_v23  ;;  %990 = vmatprep.subr.msk.bf16.mxu0 %vm1278_vm2, %v988_v24 }
  0x30   : > { %1030 = vmatprep.subr.bf16.mxu1 %v1191_v0 }
  0x36   : > { %993 = vmatpush3.bf16.xpose.msk.msra.mxu0 %vm1278_vm2, %v988_v24 }
  0x37   : > { %1033 = vmatpush3.bf16.xpose.msk.msra.mxu1 %vm1278_vm2, %v1031_v29  ;;  %996 = vmatprep.subr.msk.bf16.mxu0 %vm1278_vm2, %v994_v30 }
  0x38   : > { %1034 = vmatprep.subr.bf16.mxu1 %v1191_v0 }
  0x3e   : > { %999 = vmatpush3.bf16.xpose.msk.msra.mxu0 %vm1278_vm2, %v994_v30 }
  0x3f   : > { %1037 = vmatpush3.bf16.xpose.msk.msra.mxu1 %vm1278_vm2, %v1035_v35  ;;  %1002 = vmatprep.subr.msk.bf16.mxu0 %vm1278_vm2, %v1000_v36 }
  0x40   : > { %1038 = vmatprep.subr.bf16.mxu1 %v1191_v0 }
  0x46   : > { %1005 = vmatpush3.bf16.xpose.msk.msra.mxu0 %vm1278_vm2, %v1000_v36 }
  0x47   : > { %1041 = vmatpush3.bf16.xpose.msk.msra.mxu1 %vm1278_vm2, %v1039_v41  ;;  %1008 = vmatprep.subr.msk.bf16.mxu0 %vm1278_vm2, %v1006_v42 }
  0x48   : > { %1042 = vmatprep.subr.bf16.mxu1 %v1191_v0 }
  0x4e   : > { %1011 = vmatpush3.bf16.xpose.msk.msra.mxu0 %vm1278_vm2, %v1006_v42 }
  0x4f   : > { %1045 = vmatpush3.bf16.xpose.msk.msra.mxu1 %vm1278_vm2, %v1043_v47  ;;  %1014 = vmatprep.subr.msk.bf16.mxu0 %vm1278_vm2, %v1012_v48 }
  0x50   : > { %1046 = vmatprep.subr.bf16.mxu1 %v1191_v0  ;;  %v205_v0 = vld [vmem:[%s1289_s30 + $0x60] sm:$0xff] }
  0x56   : > { %1017 = vmatpush3.bf16.xpose.msk.msra.mxu0 %vm1278_vm2, %v1012_v48 }
  0x57   : > { %1049 = vmatpush3.bf16.xpose.msk.msra.mxu1 %vm1278_vm2, %v1047_v51 }
  0x5d   : > { %912 = vmatmul.mubr.msk.f32.vlgmr.msra.gmra.mrb[0].mxu0 %vm225_vm1, %v194_v52 }
  0x5e   : > { %968 = vmatmul.mubr.msk.f32.vlgmr.msra.gmra.mrb[0].mxu1 %vm225_vm1, %v1194_v54  ;;  %914 = vmatprep.mubr.msk.f32.mxu0 %vm225_vm1, %v195_v53 }
  0x61   : > { %915 = vmatmul.mubr.msk.f32.gmra.mrb[2].mxu0 %vm225_vm1, %v196_v55 }
  0x62   : > { %917 = vmatprep.mubr.msk.f32.mxu0 %vm225_vm1, %v197_v56 }
  0x65   : > { %918 = vmatmul.mubr.msk.f32.gmra.mrb[4].mxu0 %vm225_vm1, %v198_v57 }
  0x66   : > { %920 = vmatprep.mubr.msk.f32.mxu0 %vm225_vm1, %v199_v58 }
  0x69   : > { %921 = vmatmul.mubr.msk.f32.gmra.mrb[6].mxu0 %vm225_vm1, %v200_v59 }
  0x6a   : > { %923 = vmatprep.mubr.msk.f32.mxu0 %vm225_vm1, %v201_v60 }
  0x6d   : > { %924 = vmatmul.mubr.msk.f32.gmra.mrb[8].mxu0 %vm225_vm1, %v202_v61 }
  0x6e   : > { %926 = vmatprep.mubr.msk.f32.mxu0 %vm225_vm1, %v203_v62 }
  0x71   : > { %927 = vmatmul.mubr.msk.f32.gmra.mrb[10].mxu0 %vm225_vm1, %v204_v63 }
  0x72   : > { %929 = vmatprep.mubr.msk.f32.mxu0 %vm225_vm1, %v205_v0 }
  0x75   : > { %930 = vmatmul.mubr.msk.f32.gmra.mrb[12].mxu0 %vm225_vm1, %v206_v1 }
  0x76   : > { %932 = vmatprep.mubr.msk.f32.mxu0 %vm225_vm1, %v207_v2 }
  0x79   : > { %933 = vmatmul.mubr.msk.f32.gmra.mrb[14].mxu0 %vm225_vm1, %v208_v3 }
 0x130   : > { %v913_v7 = vpop.f32.mrb[0].mxu0 }
 0x131   : > { %v605_v8 = vmul.f32 2.0, %v913_v7  ;;  %v388_v9 = vpop.f32.mrb[1].mxu0  ;;  %v600_v10 = vpop.f32.mrb[0].mxu1 }
 0x132   : > { %v604_v11 = vmul.f32 2.0, %v388_v9  ;;  %v1394_v12 = vrot.slane %v600_v10, %v622_v6  ;;  %v969_v13 = vpop.f32.mrb[1].mxu1 }
 0x134   : > { %v916_v14 = vpop.f32.mrb[2].mxu0  ;;  %v624_v15 = vsub.f32 %v604_v11, %v1394_v12  ;;  %v625_v16 = vsub.f32 %v605_v8, %v1394_v12 }
 0x135   : > { %v607_v17 = vmul.f32 2.0, %v916_v14  ;;  %v398_v18 = vpop.f32.mrb[3].mxu0 }
 0x136   : > { %v606_v19 = vmul.f32 2.0, %v398_v18  ;;  %640 = vst [vmem:[%s1398_s5] sm:$0xff] %v624_v15  ;;  %641 = vst [vmem:[%s1398_s5 + $0x8] sm:$0xff] %v625_v16 }
 0x137   : > { %v627_v20 = vsub.f32 %v607_v17, %v1394_v12 }
 0x138   : > { %v626_v21 = vsub.f32 %v606_v19, %v1394_v12  ;;  %v919_v22 = vpop.f32.mrb[4].mxu0 }
 0x139   : > { %643 = vst [vmem:[%s1398_s5 + $0x18] sm:$0xff] %v627_v20  ;;  %v609_v23 = vmul.f32 2.0, %v919_v22  ;;  %v408_v24 = vpop.f32.mrb[5].mxu0 }
 0x13a   : > { %642 = vst [vmem:[%s1398_s5 + $0x10] sm:$0xff] %v626_v21  ;;  %v608_v25 = vmul.f32 2.0, %v408_v24 }
 0x13b   : > { %v629_v26 = vsub.f32 %v609_v23, %v1394_v12 }
 0x13c   : > { %v628_v27 = vsub.f32 %v608_v25, %v1394_v12  ;;  %v922_v28 = vpop.f32.mrb[6].mxu0 }
 0x13d   : > { %645 = vst [vmem:[%s1398_s5 + $0x28] sm:$0xff] %v629_v26  ;;  %v611_v29 = vmul.f32 2.0, %v922_v28  ;;  %v418_v30 = vpop.f32.mrb[7].mxu0 }
 0x13e   : > { %644 = vst [vmem:[%s1398_s5 + $0x20] sm:$0xff] %v628_v27  ;;  %v610_v31 = vmul.f32 2.0, %v418_v30 }
 0x13f   : > { %v631_v32 = vsub.f32 %v611_v29, %v1394_v12 }
 0x140   : > { %v630_v33 = vsub.f32 %v610_v31, %v1394_v12  ;;  %v925_v34 = vpop.f32.mrb[8].mxu0 }
 0x141   : > { %647 = vst [vmem:[%s1398_s5 + $0x38] sm:$0xff] %v631_v32  ;;  %v613_v35 = vmul.f32 2.0, %v925_v34  ;;  %v428_v36 = vpop.f32.mrb[9].mxu0 }
 0x142   : > { %646 = vst [vmem:[%s1398_s5 + $0x30] sm:$0xff] %v630_v33  ;;  %v612_v37 = vmul.f32 2.0, %v428_v36 }
 0x143   : > { %v633_v38 = vsub.f32 %v613_v35, %v1394_v12 }
 0x144   : > { %v632_v39 = vsub.f32 %v612_v37, %v1394_v12  ;;  %v928_v40 = vpop.f32.mrb[10].mxu0 }
 0x145   : > { %649 = vst [vmem:[%s1398_s5 + $0x48] sm:$0xff] %v633_v38  ;;  %v615_v41 = vmul.f32 2.0, %v928_v40  ;;  %v438_v42 = vpop.f32.mrb[11].mxu0 }
 0x146   : > { %648 = vst [vmem:[%s1398_s5 + $0x40] sm:$0xff] %v632_v39  ;;  %v614_v43 = vmul.f32 2.0, %v438_v42 }
 0x147   : > { %v635_v44 = vsub.f32 %v615_v41, %v1394_v12 }
 0x148   : > { %v634_v45 = vsub.f32 %v614_v43, %v1394_v12  ;;  %v931_v46 = vpop.f32.mrb[12].mxu0 }
 0x149   : > { %651 = vst [vmem:[%s1398_s5 + $0x58] sm:$0xff] %v635_v44  ;;  %v617_v47 = vmul.f32 2.0, %v931_v46  ;;  %v448_v48 = vpop.f32.mrb[13].mxu0 }
 0x14a   : > { %650 = vst [vmem:[%s1398_s5 + $0x50] sm:$0xff] %v634_v45  ;;  %v616_v49 = vmul.f32 2.0, %v448_v48 }
 0x14b   : > { %v637_v50 = vsub.f32 %v617_v47, %v1394_v12 }
 0x14c   : > { %v636_v51 = vsub.f32 %v616_v49, %v1394_v12  ;;  %v934_v52 = vpop.f32.mrb[14].mxu0 }
 0x14d   : > { %653 = vst [vmem:[%s1398_s5 + $0x68] sm:$0xff] %v637_v50  ;;  %v619_v53 = vmul.f32 2.0, %v934_v52  ;;  %v458_v54 = vpop.f32.mrb[15].mxu0 }
 0x14e   : > { %652 = vst [vmem:[%s1398_s5 + $0x60] sm:$0xff] %v636_v51  ;;  %v618_v55 = vmul.f32 2.0, %v458_v54 }
 0x14f   : > { %v639_v56 = vsub.f32 %v619_v53, %v1394_v12 }
 0x150   : > { %v638_v57 = vsub.f32 %v618_v55, %v1394_v12 }
 0x151   : > { %655 = vst [vmem:[%s1398_s5 + $0x78] sm:$0xff] %v639_v56 }
 0x152   : > { %654 = vst [vmem:[%s1398_s5 + $0x70] sm:$0xff] %v638_v57 }
 0x153   : > { %1124 = shalt.err (!%p1121_p5)
}
 0x154   : > { %s1125_s25 = scalar_lea.hbm %s1432_s16, 2048  ;;  %s1129_s28 = scalar_lea.hbm %s1489_s2, 4096 }
 0x155   : > { %p1126_p6 = scmp.ne.s32.totalorder %s1432_s16, %s1125_s25  ;;  %p1130_p10 = scmp.lt.u32.totalorder %s1432_s16, %s1489_s2 }
 0x156   : > { %p1131_p11 = scmp.lt.u32.totalorder %s1129_s28, %s1125_s25  ;;  %p1133_p13 = scmp.lt.u32.totalorder %s1125_s25, %s1432_s16 }
 0x157   : > { %p1127_p7 = pnand %p1126_p6, %p1253_p4 }
 0x158   : > { %p1132_p12 = por %p1131_p11, %p1130_p10 }
 0x159   : > { %p1128_p9 = pneg %p1127_p7 }
 0x15a   : > { %p1134_p0 = por %p1133_p13, %p1132_p12 }
 0x15c   : > { %p1135_p1 = pnand %p1134_p0, %p1128_p9 }
 0x15e   : > { %1138 = shalt.err (!%p1135_p1)
}
 0x15f   : > { %s1196_s3 = smov 128   ;;  %s1197_s4 = smov 8  }
 0x160   : > { %1050 = dma.vmem_to_hbm [thread:$0]  (%p1253_p4), %s1434_s7, 2048, %s1432_s16, %s1441_s12, %s1196_s3, %s1196_s3, %s1197_s4  }
 0x161 PF: > { %p1056_p2 = scmp.ge.s32.totalorder %s1189_s14, 2  ;;  %s687_s5 = sand.u32 1, %s1169_s9  }
 0x162   : > { %s688_s6 = scalar_lea.sflag [#allocation3], %s687_s5 }
 0x163   : > { %p1053_p3 = pnand %p1056_p2, %p1260_p8 }
 0x165   : > { %1164 = dma.done.wait (!%p1053_p3), %s688_s6, 2048  }
 0x166   : > { %1166 = vsyncadd (!%p1053_p3), %s688_s6, 4294965248  ;;  %s15_s14 = sadd.s32 1, %s1189_s14   ;;  %s1494_s9 = smov %s1173_s10 }
 0x167   : > { %p12_p5 = scmp.ge.s32.totalorder %s15_s14, 4   ;;  %s1495_s10 = smov %s1177_s11 }
 0x168   : > { %s1496_s11 = smov %s1266_s22  ;;  %s1497_s12 = smov %s1185_s13 }
 0x169   : > { %s1498_s13 = smov %s1500_s17  ;;  %14 = sbr.rel (!%p12_p5) target bundleno = 4 (0x4), region = 66 }
 0x170   :  { %693 = vsyncpa [#allocation3], 1 }
 0x171   :  { %695 = vsyncpa [#allocation3 + $0x1], 1 }

</bundles_post_ra>
